<compile_context>
chip_gen: v7x
topology: tpu7x:2x2x1
jax: 0.10.0
libtpu: 0.0.40
codegen_flags: <defaults>
</compile_context>

<pallas_src>
import functools

import jax
import jax.numpy as jnp
from jax.experimental import pallas as pl
from jax.experimental.pallas import tpu as pltpu

IN_FEATURES = 1024
OUT_FEATURES = 2
# 2048 x 1024 f32 tile = 8 MiB; double-buffered = 16 MiB of x buffers.
DEFAULT_BLOCK_BATCH = 2048
# Above the default scoped VMEM on v5e (16 MiB) / v6e / v7x (32 MiB); safely
# below v7x's 64 MiB physical VMEM.
VMEM_LIMIT_BYTES = 48 << 20


def _round_up(n, m):
    return ((n + m - 1) // m) * m


def _linear_sigmoid_kernel(x_ref, w_ref, b_ref, o_ref, *, compute_dtype):
    # x_ref: (tb, 1024)   w_ref: (2, 1024)   b_ref: (1, 2)   o_ref: (tb, 2)
    x = x_ref[...]
    w = w_ref[...]
    cd = compute_dtype
    if cd is None:
        cd = jnp.promote_types(x.dtype, w.dtype)
    # In-kernel cast (VPU, no extra HBM traffic).  bf16 operands keep the MXU
    # cost well under the HBM stream time on all of v5e/v6e/v7x; accumulation
    # stays f32 via preferred_element_type.
    x = x.astype(cd)
    w = w.astype(cd)
    # Contract x dim 1 with w dim 1 (w kept in native lane-dense (2, 1024)).
    y = jax.lax.dot_general(
        x, w,
        dimension_numbers=(((1,), (1,)), ((), ())),
        preferred_element_type=jnp.float32)
    y = y + b_ref[...].astype(jnp.float32)          # f32 epilogue, (1,2) bcast
    o_ref[...] = jax.nn.sigmoid(y).astype(o_ref.dtype)


@functools.partial(
    jax.jit, static_argnames=("block_batch", "compute_dtype", "input_buffers"))
def linear_sigmoid(x, w, b, *, block_batch=DEFAULT_BLOCK_BATCH,
                   compute_dtype=jnp.bfloat16, input_buffers=2):
    """sigmoid(x @ w.T + b), matching nn.Linear(1024, 2) + nn.Sigmoid().

    x: [B, 1024]  (f32, or bf16 if the producer already emits bf16 — no
                   wrapper cast is ever done here)
    w: [2, 1024]  native nn.Linear weight layout (lane-dense)
    b: [2]
    compute_dtype: dtype the dot operands are cast to *inside* the kernel
                   (default bf16; accumulation is always f32).  Pass None for
                   an exact-f32 matmul.
    input_buffers: pipeline depth for the x stream (sweep 2 vs 3 on v7x).
    """
    B = x.shape[0]
    b2d = b.reshape(1, OUT_FEATURES).astype(jnp.float32)

    # Batch tile: multiple of 8 sublanes, no larger than needed for B.
    tb = _round_up(min(block_batch, _round_up(B, 8)), 8)
    grid = (pl.cdiv(B, tb),)   # edge tile masked by Pallas; no jnp.pad copy

    cost = pl.CostEstimate(
        flops=2 * B * IN_FEATURES * OUT_FEATURES,
        transcendentals=B * OUT_FEATURES,
        bytes_accessed=(B * IN_FEATURES * x.dtype.itemsize          # x read
                        + OUT_FEATURES * IN_FEATURES * w.dtype.itemsize  # W
                        + OUT_FEATURES * 4                          # bias
                        + B * OUT_FEATURES * 4))                    # out write

    x_spec_kwargs = {}
    if input_buffers != 2:
        x_spec_kwargs["pipeline_mode"] = pl.Buffered(input_buffers)

    out = pl.pallas_call(
        functools.partial(_linear_sigmoid_kernel, compute_dtype=compute_dtype),
        out_shape=jax.ShapeDtypeStruct((B, OUT_FEATURES), jnp.float32),
        grid_spec=pltpu.PrefetchScalarGridSpec(
            num_scalar_prefetch=0,
            grid=grid,
            in_specs=[
                # x: one batch tile per grid step (pipelined HBM->VMEM DMA).
                pl.BlockSpec((tb, IN_FEATURES), lambda i: (i, 0),
                             **x_spec_kwargs),
                # W and bias: constant block index -> fetched once, resident.
                pl.BlockSpec((OUT_FEATURES, IN_FEATURES), lambda i: (0, 0)),
                pl.BlockSpec((1, OUT_FEATURES), lambda i: (0, 0)),
            ],
            out_specs=pl.BlockSpec((tb, OUT_FEATURES), lambda i: (i, 0)),
        ),
        compiler_params=pltpu.CompilerParams(
            # Batch tiles are independent -> shard across v7x's 2 TensorCores.
            dimension_semantics=("parallel",),
            vmem_limit_bytes=VMEM_LIMIT_BYTES),
        cost_estimate=cost,
    )(x, w, b2d)

    return out


def reference(x, w, b):
    return jax.nn.sigmoid(x.astype(jnp.float32) @ w.T + b[None, :])


if __name__ == "__main__":
    key = jax.random.PRNGKey(0)
    kx, kw, kb, kx2 = jax.random.split(key, 4)

    batch = 8
    # nn.Linear(1024, 2) parameter shapes: weight (2, 1024), bias (2).
    bound = 1.0 / (IN_FEATURES ** 0.5)
    w = jax.random.uniform(kw, (OUT_FEATURES, IN_FEATURES),
                           minval=-bound, maxval=bound, dtype=jnp.float32)
    b = jax.random.uniform(kb, (OUT_FEATURES,),
                           minval=-bound, maxval=bound, dtype=jnp.float32)
    x = jax.random.normal(kx, (batch, IN_FEATURES), dtype=jnp.float32)
    ref = reference(x, w, b)

    # Default path: f32 x in HBM, in-kernel bf16 operands, f32 accumulate.
    out = jax.block_until_ready(linear_sigmoid(x, w, b))
    assert out.shape == (batch, OUT_FEATURES)
    assert jnp.allclose(out, ref, atol=2e-2, rtol=2e-2), "bf16-compute mismatch"

    # Exact f32 matmul path.
    out_f32 = jax.block_until_ready(linear_sigmoid(x, w, b, compute_dtype=None))
    assert jnp.allclose(out_f32, ref, atol=1e-5, rtol=1e-5), "f32 mismatch"

    # Upstream-bf16 producer path (halved x HBM traffic; cast is NOT done in
    # the wrapper — this simulates a producer that already emits bf16).
    x_bf16 = x.astype(jnp.bfloat16)
    out_bf16 = jax.block_until_ready(linear_sigmoid(x_bf16, w, b))
    assert out_bf16.shape == (batch, OUT_FEATURES)
    assert jnp.allclose(out_bf16, ref, atol=2e-2, rtol=2e-2), "bf16-input mismatch"

    # Ragged batch: exercises cdiv grid + masked edge tile (no jnp.pad copy)
    # and a multi-step pipelined grid.
    batch2 = 20
    x2 = jax.random.normal(kx2, (batch2, IN_FEATURES), dtype=jnp.float32)
    out2 = jax.block_until_ready(linear_sigmoid(x2, w, b, block_batch=16))
    ref2 = reference(x2, w, b)
    assert out2.shape == (batch2, OUT_FEATURES)
    assert jnp.allclose(out2, ref2, atol=2e-2, rtol=2e-2), "ragged-batch mismatch"

    print("KERNEL_OK")
</pallas_src>

<mosaic_0001>
module attributes {stable_mosaic.version = 11 : i64} {
  func.func @_linear_sigmoid_kernel(%arg0: i32, %arg1: memref<8x1024xf32, #tpu.memory_space<vmem>>, %arg2: memref<2x1024xf32, #tpu.memory_space<vmem>>, %arg3: memref<1x2xf32, #tpu.memory_space<vmem>>, %arg4: memref<8x2xf32, #tpu.memory_space<vmem>>) attributes {dimension_semantics = [#tpu.dimension_semantics<parallel>], iteration_bounds = array<i64: 1>, scalar_prefetch = 0 : i64, scratch_operands = 0 : i64, tpu.core_type = #tpu.core_type<tc>, window_params = [{transform_indices = @transform_0, window_bounds = array<i64: 8, 1024>}, {pipeline_mode = #tpu.pipeline_mode<synchronous>, transform_indices = @transform_1, window_bounds = array<i64: 2, 1024>}, {pipeline_mode = #tpu.pipeline_mode<synchronous>, transform_indices = @transform_2, window_bounds = array<i64: 1, 2>}, {transform_indices = @transform_3, window_bounds = array<i64: 8, 2>}]} {
    %c0 = arith.constant 0 : index
    %c0_0 = arith.constant 0 : index
    %0 = vector.load %arg1[%c0, %c0_0] : memref<8x1024xf32, #tpu.memory_space<vmem>>, vector<8x1024xf32>
    %c0_1 = arith.constant 0 : index
    %c0_2 = arith.constant 0 : index
    %1 = vector.load %arg2[%c0_1, %c0_2] : memref<2x1024xf32, #tpu.memory_space<vmem>>, vector<2x1024xf32>
    %2 = arith.truncf %0 : vector<8x1024xf32> to vector<8x1024xbf16>
    %3 = arith.truncf %1 : vector<2x1024xf32> to vector<2x1024xbf16>
    %cst = arith.constant dense<0.000000e+00> : vector<8x2xf32>
    %4 = tpu.matmul %2, %3, %cst {dimension_numbers = #tpu.dot_dimension_numbers<[1], [1], [0], [0], [0, 0, 1, 0], [], []>} : vector<8x1024xbf16>, vector<2x1024xbf16>, vector<8x2xf32> -> vector<8x2xf32>
    %c0_3 = arith.constant 0 : index
    %c0_4 = arith.constant 0 : index
    %5 = vector.load %arg3[%c0_3, %c0_4] : memref<1x2xf32, #tpu.memory_space<vmem>>, vector<1x2xf32>
    %6 = vector.broadcast %5 : vector<1x2xf32> to vector<8x2xf32>
    %7 = arith.addf %4, %6 : vector<8x2xf32>
    %8 = arith.negf %7 : vector<8x2xf32>
    %9 = math.exp %8 : vector<8x2xf32>
    %cst_5 = arith.constant 1.000000e+00 : f32
    %10 = vector.broadcast %cst_5 : f32 to vector<8x2xf32>
    %11 = arith.addf %10, %9 : vector<8x2xf32>
    %12 = arith.divf %10, %11 : vector<8x2xf32>
    %c0_6 = arith.constant 0 : index
    %c0_7 = arith.constant 0 : index
    %13 = vector.load %arg4[%c0_6, %c0_7] : memref<8x2xf32, #tpu.memory_space<vmem>>, vector<8x2xf32>
    tpu.vector_store %arg4[%c0_6, %c0_7], %12 {strides = array<i32>} : memref<8x2xf32, #tpu.memory_space<vmem>>, vector<8x2xf32>,
    return
  }
  func.func @transform_0(%arg0: i32) -> (i32, i32) {
    %c0_i32 = arith.constant 0 : i32
    %c0_i32_0 = arith.constant 0 : i32
    return %arg0, %c0_i32 : i32, i32
  }
  func.func @transform_1(%arg0: i32) -> (i32, i32) {
    %c0_i32 = arith.constant 0 : i32
    %c0_i32_0 = arith.constant 0 : i32
    %c0_i32_1 = arith.constant 0 : i32
    return %c0_i32, %c0_i32_0 : i32, i32
  }
  func.func @transform_2(%arg0: i32) -> (i32, i32) {
    %c0_i32 = arith.constant 0 : i32
    %c0_i32_0 = arith.constant 0 : i32
    %c0_i32_1 = arith.constant 0 : i32
    return %c0_i32, %c0_i32_0 : i32, i32
  }
  func.func @transform_3(%arg0: i32) -> (i32, i32) {
    %c0_i32 = arith.constant 0 : i32
    %c0_i32_0 = arith.constant 0 : i32
    return %arg0, %c0_i32 : i32, i32
  }
}

</mosaic_0001>

<bundles_post_ra>
// kernel: linear_sigmoid.1
= control target key start
LH: loop header
LB: loop body
LE: loop exit
PB: predicated region body
PF: predicated region fallthrough
CT: control target
= control target key end

     0   :  { %8 = vsyncpa [#allocation3], 0  ;;  %s412_s0 = inlined_call_operand.hbm [shape: f32[8,1024], index: 0, kind: input, shape index: {}]   ;;  %s413_s1 = inlined_call_operand.hbm [shape: f32[2,1024], index: 1, kind: input, shape index: {}]   ;;  %s414_s2 = inlined_call_operand.vmem [shape: f32[1,2], index: 2, kind: input, shape index: {}]   ;;  %s415_s3 = inlined_call_operand.vmem [shape: f32[8,2], index: 3, kind: output, shape index: {}]  }
   0x1   :  { %9 = vsyncpa [#allocation5], 0  ;;  %s359_s12 = smov [#allocation2]   ;;  %s360_s14 = smov [#allocation4]  }
   0x2   :  { %s16_s13 = sshll.u32 %s359_s12, 4  ;;  %s26_s15 = sshll.u32 %s360_s14, 4  ;;  %s17_s13 = int_to_ptr.vmem [resolvable:$true] %s16_s13  ;;  %s27_s15 = int_to_ptr.vmem [resolvable:$true] %s26_s15 }
   0x3   :  { %s311_s18 = scalar_lea.hbm %s412_s0, 1024 }
   0x4   :  { %p312_p0 = scmp.ne.s32.totalorder %s412_s0, %s311_s18  ;;  %p315_p1 = scmp.lt.u32.totalorder %s311_s18, %s412_s0 }
   0x6   :  { %p317_p2 = pnand %p315_p1, %p312_p0 }
   0x8   :  { %320 = shalt.err (!%p317_p2)
}
   0x9   :  { %s321_s23 = scalar_lea.vmem %s17_s13, 1024  ;;  %p326_p4 = scmp.lt.s32.totalorder %s17_s13, %s17_s13 }
   0xa   :  { %p322_p3 = scmp.ne.s32.totalorder %s17_s13, %s321_s23  ;;  %p327_p5 = scmp.lt.s32.totalorder %s321_s23, %s321_s23 }
   0xc   :  { %p328_p6 = por %p327_p5, %p326_p4 }
   0xe   :  { %p329_p7 = pnand %p328_p6, %p322_p3 }
  0x10   :  { %332 = shalt.err (!%p329_p7)
}
  0x11   :  { %19 = dma.hbm_to_vmem [thread:$0]  %s412_s0, 1024, %s17_s13, [#allocation3]  }
  0x12   :  { %s333_s28 = scalar_lea.hbm %s413_s1, 256 }
  0x13   :  { %p334_p8 = scmp.ne.s32.totalorder %s413_s1, %s333_s28  ;;  %p337_p9 = scmp.lt.u32.totalorder %s333_s28, %s413_s1 }
  0x15   :  { %p339_p10 = pnand %p337_p9, %p334_p8 }
  0x17   :  { %342 = shalt.err (!%p339_p10)
}
  0x18   :  { %s343_s6 = scalar_lea.vmem %s27_s15, 256  ;;  %p348_p12 = scmp.lt.s32.totalorder %s27_s15, %s27_s15 }
  0x19   :  { %p344_p11 = scmp.ne.s32.totalorder %s27_s15, %s343_s6  ;;  %p349_p13 = scmp.lt.s32.totalorder %s343_s6, %s343_s6 }
  0x1b   :  { %p350_p0 = por %p349_p13, %p348_p12 }
  0x1d   :  { %p351_p1 = pnand %p350_p0, %p344_p11 }
  0x1f   :  { %354 = shalt.err (!%p351_p1)
}
  0x20   :  { %29 = dma.hbm_to_vmem [thread:$0]  %s413_s1, 256, %s27_s15, [#allocation5]  }
  0x21   :  { %355 = dma.done.wait [#allocation3], 1024  }
  0x22   :  { %356 = vsyncadd [#allocation3], 4294966272 }
  0x23   :  { %357 = dma.done.wait [#allocation5], 256  }
  0x24   :  { %358 = vsyncadd [#allocation5], 4294967040  ;;  %v63_v0 = vlaneseq  ;;  %v361_v1 = vmov 1983009808   ;;  %v47_v6 = vld [vmem:[#allocation4] sm:$0xff]  ;;  %v48_v7 = vld [vmem:[#allocation4 + $0x8] sm:$0xff] }
  0x25   :  { %v61_v2 = vunpack.c.l.s4 %v361_v1  ;;  %v40_v8 = vld [vmem:[#allocation2 + $0x8] sm:$0xff]  ;;  %v59_v9 = vcombine.high %v47_v6, %v47_v6  ;;  %v76_v11 = vcombine.high %v48_v7, %v48_v7  ;;  %v39_v26 = vld [vmem:[#allocation2] sm:$0xff]  ;;  %v42_v30 = vld [vmem:[#allocation2 + $0x18] sm:$0xff]  ;;  %vm282_vm0 = vcmask 15360  }
  0x26   :  { %v64_v3 = vshrl.u32 %v63_v0, 7  ;;  %v44_v13 = vld [vmem:[#allocation2 + $0x28] sm:$0xff]  ;;  %v50_v14 = vpack.c.bf16 %v40_v8, %v40_v8  ;;  %v43_v28 = vld [vmem:[#allocation2 + $0x20] sm:$0xff]  ;;  %v46_v31 = vld [vmem:[#allocation2 + $0x38] sm:$0xff]  ;;  %v49_v32 = vpack.c.bf16 %v39_v26, %v39_v26  ;;  %v52_v36 = vpack.c.bf16 %v42_v30, %v42_v30 }
  0x27   :  { %v62_v4 = vunpack.c.0.s8 %v61_v2  ;;  %v54_v15 = vpack.c.bf16 %v44_v13, %v44_v13  ;;  %v53_v33 = vpack.c.bf16 %v43_v28, %v43_v28  ;;  %v56_v37 = vpack.c.bf16 %v46_v31, %v46_v31  ;;  %v41_v38 = vld [vmem:[#allocation2 + $0x10] sm:$0xff]  ;;  %v290_v42 = vld [vmem:[%s414_s2] ss:$0 sm:$0xff] }
  0x28   :  { %148 = vmatprep.mubr.bf16.mxu1 %v50_v14  ;;  %v45_v39 = vld [vmem:[#allocation2 + $0x30] sm:$0xff]  ;;  %v51_v40 = vpack.c.bf16 %v41_v38, %v41_v38 }
  0x29   :  { %v65_v5 = vsub.s32 %v62_v4, %v64_v3  ;;  %228 = vmatprep.mubr.bf16.mxu0 %v54_v15  ;;  %v55_v41 = vpack.c.bf16 %v45_v39, %v45_v39 }
  0x2b   :  { %v66_v10 = vrot.slane %v47_v6, %v65_v5  ;;  %v83_v12 = vrot.slane %v48_v7, %v65_v5  ;;  %v73_v20 = vrot.slane %v59_v9, %v65_v5  ;;  %v90_v21 = vrot.slane %v76_v11, %v65_v5 }
  0x2d   :  { %v74_v16 = vcombine.high %v66_v10, %v66_v10  ;;  %v91_v17 = vcombine.high %v83_v12, %v83_v12  ;;  %v101_v18 = vpack.c.bf16 %v66_v10, %v66_v10  ;;  %v105_v19 = vpack.c.bf16 %v83_v12, %v83_v12 }
  0x2e   :  { %v75_v24 = vcombine.high %v73_v20, %v73_v20  ;;  %v92_v25 = vcombine.high %v90_v21, %v90_v21  ;;  %v103_v34 = vpack.c.bf16 %v73_v20, %v73_v20  ;;  %v107_v35 = vpack.c.bf16 %v90_v21, %v90_v21 }
  0x2f   :  { %v102_v22 = vpack.c.bf16 %v74_v16, %v74_v16  ;;  %v106_v23 = vpack.c.bf16 %v91_v17, %v91_v17 }
  0x30   :  { %v104_v27 = vpack.c.bf16 %v75_v24, %v75_v24  ;;  %v108_v29 = vpack.c.bf16 %v92_v25, %v92_v25 }
  0x31   :  { %116 = vmatprep.subr.bf16.mxu1 %v102_v22  ;;  %196 = vmatprep.subr.bf16.mxu0 %v106_v23 }
  0x32   :  { %117 = vmatpush1.bf16.xpose.msra.mxu1 %v101_v18  ;;  %197 = vmatpush1.bf16.xpose.msra.mxu0 %v105_v19 }
  0x33   :  { %156 = vmatprep.subr.bf16.mxu1 %v104_v27  ;;  %236 = vmatprep.subr.bf16.mxu0 %v108_v29 }
  0x39   :  { %149 = vmatmul.mubr.bf16.vlgmr.msra.gmra.mrb[0].mxu1 %v49_v32  ;;  %229 = vmatmul.mubr.bf16.vlgmr.msra.gmra.mrb[0].mxu0 %v53_v33 }
  0x3a   :  { %157 = vmatpush1.bf16.xpose.msra.mxu1 %v103_v34  ;;  %237 = vmatpush1.bf16.xpose.msra.mxu0 %v107_v35 }
  0x3b   :  { %188 = vmatprep.mubr.bf16.mxu1 %v52_v36  ;;  %268 = vmatprep.mubr.bf16.mxu0 %v56_v37 }
  0x45   :  { %189 = vmatmul.mubr.bf16.vlgmr.msra.gmra.mrb[0].mxu1 %v51_v40  ;;  %269 = vmatmul.mubr.bf16.vlgmr.msra.gmra.mrb[0].mxu0 %v55_v41 }
 0x118   :  { %v190_v43 = vpop.f32.mrb[0].mxu1  ;;  %v270_v44 = vpop.f32.mrb[0].mxu0 }
 0x119   :  { %v292_v45 = vadd.f32 %v290_v42, %v190_v43  ;;  %v192_v46 = vpop.f32.mrb[1].mxu1  ;;  %v272_v47 = vpop.f32.mrb[1].mxu0 }
 0x11a   :  { %v193_v48 = vpop.f32.mrb[2].mxu1  ;;  %v273_v49 = vpop.f32.mrb[2].mxu0 }
 0x11b   :  { %v293_v50 = vadd.f32 %v292_v45, %v270_v44  ;;  %v194_v51 = vpop.f32.mrb[3].mxu1  ;;  %v274_v52 = vpop.f32.mrb[3].mxu0 }
 0x11d   :  { %v291_v53 = vmul.f32 -1.442695, %v293_v50 }
 0x11f   :  { %307 = vpow2.f32 %v291_v53 }
 0x129   :  { %v308_v54 = vpop.eup %307 }
 0x12a   :  { %v279_v55 = vadd.f32 1.0, %v308_v54 }
 0x12c   :  { %309 = vrcp.f32 %v279_v55 }
 0x136   :  { %v310_v56 = vpop.eup %309 }
 0x137   :  { %283 = vst.msk [vmem:[%s415_s3] sm:$0xff] %vm282_vm0, %v310_v56 }
 0x138   :  { %288 = vsyncpa [#allocation3], 1 }
 0x139   :  { %289 = vsyncpa [#allocation5], 1 }

</bundles_post_ra>
